<compile_context>
chip_gen: v7x
topology: tpu7x:2x2x1
jax: 0.10.0
libtpu: 0.0.40
codegen_flags: <defaults>
</compile_context>

<pallas_src>
import jax
import jax.numpy as jnp
from jax.experimental import pallas as pl
from jax.experimental.pallas import tpu as pltpu

# padded / logical sizes (compile-time constants for the kernel)
N_CLASSES = 2      # real number of output classes
HID_PAD = 128      # hidden 64 and lin 32 both zero-padded to a full lane width
OUT_PAD = 128      # class dim padded to a full lane width (lane-dense store)


# ---------------------------------------------------------------------------
# Pallas kernel: fused 3-layer GCN + mean pooling + MLP head + log-softmax
# ---------------------------------------------------------------------------
def gcnclf_kernel(x_ref, a_ref, pool_ref, w1_ref, w_ref, b_ref, out_ref):
    a = a_ref[...]                                  # (Np, Np) bf16, normalized adj
    x = x_ref[...].astype(jnp.bfloat16)             # (Np, F)
    b = b_ref[...]                                  # (8, 128) f32 packed biases

    # ---- GCN layer 1, reassociated: (A @ X) @ W1 + b1, relu  (F << hidden) ----
    ax = jnp.dot(a, x, preferred_element_type=jnp.float32)              # (Np, F)
    h = jnp.dot(ax.astype(jnp.bfloat16), w1_ref[...],
                preferred_element_type=jnp.float32)                     # (Np, 128)
    h = jnp.maximum(h + b[0:1, :], 0.0)

    # ---- GCN layers 2 & 3: A @ (H @ W) + b, relu ----
    def gcn_layer(h, w, bias):
        hw = jnp.dot(h.astype(jnp.bfloat16), w,
                     preferred_element_type=jnp.float32)
        agg = jnp.dot(a, hw.astype(jnp.bfloat16),
                      preferred_element_type=jnp.float32)
        return jnp.maximum(agg + bias, 0.0)

    h = gcn_layer(h, w_ref[0], b[1:2, :])           # (Np, 128)
    h = gcn_layer(h, w_ref[1], b[2:3, :])           # (Np, 128)

    # ---- global mean pool over nodes of each graph ----
    g = jnp.dot(pool_ref[...].astype(jnp.bfloat16), h.astype(jnp.bfloat16),
                preferred_element_type=jnp.float32)                     # (Gp, 128)

    # ---- lin: 64 -> 32 (padded 128 -> 128), relu ----
    g = jnp.dot(g.astype(jnp.bfloat16), w_ref[2],
                preferred_element_type=jnp.float32) + b[3:4, :]
    g = jnp.maximum(g, 0.0)                                             # (Gp, 128)

    # ---- lin2: 32 -> 2 (padded 128 -> 128) ----
    logits = jnp.dot(g.astype(jnp.bfloat16), w_ref[3],
                     preferred_element_type=jnp.float32) + b[4:5, :]    # (Gp, 128)

    # ---- LogSoftmax(dim=1) over the N_CLASSES real columns only ----
    col = jax.lax.broadcasted_iota(jnp.int32, logits.shape, 1)
    valid = col < N_CLASSES
    masked = jnp.where(valid, logits, jnp.float32(-1e30))
    m = jnp.max(masked, axis=1, keepdims=True)
    z = masked - m
    s = jnp.sum(jnp.where(valid, jnp.exp(z), 0.0), axis=1, keepdims=True)
    out_ref[...] = z - jnp.log(s)                   # lane-dense (Gp, 128) store


# ---------------------------------------------------------------------------
# Wrapper: pad / pack / cast, invoke the kernel, slice back to (G, 2)
# ---------------------------------------------------------------------------
def _pad2d(x, rows, cols):
    r, c = x.shape
    return jnp.pad(x, ((0, rows - r), (0, cols - c)))


def gcnclf_forward(x, a_norm, pool, params):
    (w1, b1, w2, b2, w3, b3, lw, lb, l2w, l2b) = params
    n_nodes, n_feat = x.shape
    n_graphs = pool.shape[0]

    # Pad nodes to a lane-dense multiple of 128, graphs to a sublane multiple of 8,
    # input features to a sublane multiple of 8 (contraction dim of W1).
    n_pad = max(128, ((n_nodes + 127) // 128) * 128)
    g_pad = max(8, ((n_graphs + 7) // 8) * 8)
    f_pad = max(8, ((n_feat + 7) // 8) * 8)

    x_p = _pad2d(x.astype(jnp.float32), n_pad, f_pad)
    a_p = _pad2d(a_norm.astype(jnp.float32), n_pad, n_pad).astype(jnp.bfloat16)
    p_p = _pad2d(pool.astype(jnp.float32), g_pad, n_pad)

    # Coalesced parameters: one bf16 weight stack + one f32 bias slab.
    w1_p = _pad2d(w1, f_pad, HID_PAD).astype(jnp.bfloat16)          # (F, 128)
    w_stack = jnp.stack([
        _pad2d(w2, HID_PAD, HID_PAD),                               # conv2
        _pad2d(w3, HID_PAD, HID_PAD),                               # conv3
        _pad2d(lw, HID_PAD, HID_PAD),                               # lin  (64->32)
        _pad2d(l2w, HID_PAD, OUT_PAD),                              # lin2 (32->2)
    ]).astype(jnp.bfloat16)                                         # (4, 128, 128)

    b_stack = jnp.zeros((8, HID_PAD), jnp.float32)
    b_stack = b_stack.at[0, : b1.shape[-1]].set(b1.reshape(-1))
    b_stack = b_stack.at[1, : b2.shape[-1]].set(b2.reshape(-1))
    b_stack = b_stack.at[2, : b3.shape[-1]].set(b3.reshape(-1))
    b_stack = b_stack.at[3, : lb.shape[-1]].set(lb.reshape(-1))
    b_stack = b_stack.at[4, : l2b.shape[-1]].set(l2b.reshape(-1))

    vmem_spec = pl.BlockSpec(memory_space=pltpu.MemorySpace.VMEM)

    # NOTE: for many graph batches, promote the batch dim to a leading "parallel"
    # grid axis (weights get a constant index_map and stay VMEM-resident) so the
    # per-call overhead amortizes and v7x's 2 TensorCores both run; for very large
    # N, tile A over node-row blocks instead of keeping it fully resident.
    out_pad = pl.pallas_call(
        gcnclf_kernel,
        out_shape=jax.ShapeDtypeStruct((g_pad, OUT_PAD), jnp.float32),
        in_specs=[vmem_spec] * 6,
        out_specs=vmem_spec,
        compiler_params=pltpu.CompilerParams(vmem_limit_bytes=32 * 1024 * 1024),
    )(x_p, a_p, p_p, w1_p, w_stack, b_stack)

    return out_pad[:n_graphs, :N_CLASSES]


# ---------------------------------------------------------------------------
# Plain-JAX glue: densify graph structure (GCN normalization, pooling matrix)
# ---------------------------------------------------------------------------
def build_gcn_norm_adj(edge_index, edge_weight, num_nodes):
    """Dense D^{-1/2}(A + I)D^{-1/2}, matching PyG gcn_norm with self loops."""
    src = edge_index[0]
    dst = edge_index[1]
    a = jnp.zeros((num_nodes, num_nodes), jnp.float32)
    a = a.at[dst, src].add(edge_weight.astype(jnp.float32))  # aggregate at target
    a = a + jnp.eye(num_nodes, dtype=jnp.float32)            # self loops, weight 1
    deg = jnp.sum(a, axis=1)
    dinv = jnp.where(deg > 0, 1.0 / jnp.sqrt(deg), 0.0)
    return dinv[:, None] * a * dinv[None, :]


def build_mean_pool(batch, num_nodes, num_graphs):
    """P[g, n] = 1/|graph g| if batch[n] == g else 0."""
    onehot = (batch[None, :] == jnp.arange(num_graphs)[:, None]).astype(jnp.float32)
    counts = jnp.maximum(jnp.sum(onehot, axis=1, keepdims=True), 1.0)
    return onehot / counts


# ---------------------------------------------------------------------------
# Deterministic parameter init (shapes follow GCNClf.__init__) + f32 reference
# ---------------------------------------------------------------------------
def init_params(key, n_node_features):
    def glorot(key, shape):
        fan_in, fan_out = shape
        lim = jnp.sqrt(6.0 / (fan_in + fan_out))
        return jax.random.uniform(key, shape, jnp.float32, -lim, lim)

    ks = jax.random.split(key, 5)
    w1 = glorot(ks[0], (n_node_features, 64)); b1 = jnp.zeros((1, 64), jnp.float32)
    w2 = glorot(ks[1], (64, 64));              b2 = jnp.zeros((1, 64), jnp.float32)
    w3 = glorot(ks[2], (64, 64));              b3 = jnp.zeros((1, 64), jnp.float32)
    lw = glorot(ks[3], (64, 32));              lb = jnp.zeros((1, 32), jnp.float32)
    l2w = glorot(ks[4], (32, 2));              l2b = jnp.zeros((1, 2), jnp.float32)
    return (w1, b1, w2, b2, w3, b3, lw, lb, l2w, l2b)


def reference_forward(x, a_norm, pool, params):
    (w1, b1, w2, b2, w3, b3, lw, lb, l2w, l2b) = params
    h = jax.nn.relu(a_norm @ (x @ w1) + b1)
    h = jax.nn.relu(a_norm @ (h @ w2) + b2)
    h = jax.nn.relu(a_norm @ (h @ w3) + b3)
    g = pool @ h
    g = jax.nn.relu(g @ lw + lb)
    logits = g @ l2w + l2b
    return jax.nn.log_softmax(logits, axis=1)


# ---------------------------------------------------------------------------
if __name__ == "__main__":
    N_NODES = 16
    N_FEAT = 8
    N_EDGES = 40
    N_GRAPHS = 2

    key = jax.random.PRNGKey(0)
    k_x, k_ei, k_ew, k_params = jax.random.split(key, 4)

    # synthetic graph batch: 2 graphs of 8 nodes each (block-diagonal adjacency)
    x = jax.random.normal(k_x, (N_NODES, N_FEAT), jnp.float32)
    batch = jnp.concatenate([jnp.zeros(8, jnp.int32), jnp.ones(8, jnp.int32)])
    src_lo = jax.random.randint(k_ei, (N_EDGES // 2,), 0, 8)
    dst_lo = jax.random.randint(jax.random.fold_in(k_ei, 1), (N_EDGES // 2,), 0, 8)
    src_hi = jax.random.randint(jax.random.fold_in(k_ei, 2), (N_EDGES // 2,), 8, 16)
    dst_hi = jax.random.randint(jax.random.fold_in(k_ei, 3), (N_EDGES // 2,), 8, 16)
    edge_index = jnp.stack([jnp.concatenate([src_lo, src_hi]),
                            jnp.concatenate([dst_lo, dst_hi])])        # (2, E)
    edge_weight = jax.random.uniform(k_ew, (N_EDGES,), jnp.float32, 0.1, 1.0)

    params = init_params(k_params, N_FEAT)

    a_norm = build_gcn_norm_adj(edge_index, edge_weight, N_NODES)
    pool = build_mean_pool(batch, N_NODES, N_GRAPHS)

    out = gcnclf_forward(x, a_norm, pool, params)
    out = jax.block_until_ready(out)

    # sanity: shape, log-softmax rows exponentiate-sum to ~1, matches f32 reference
    assert out.shape == (N_GRAPHS, N_CLASSES)
    row_sums = jnp.exp(out).sum(axis=1)
    assert bool(jnp.all(jnp.abs(row_sums - 1.0) < 1e-4))

    ref = reference_forward(x, a_norm, pool, params)
    assert bool(jnp.allclose(out, ref, atol=1e-1, rtol=1e-1)), (out, ref)

    print("KERNEL_OK")
</pallas_src>

<mosaic_0001>
module attributes {stable_mosaic.version = 11 : i64} {
  func.func @gcnclf_kernel(%arg0: memref<128x8xf32, #tpu.memory_space<vmem>>, %arg1: memref<128x128xbf16, #tpu.memory_space<vmem>>, %arg2: memref<8x128xf32, #tpu.memory_space<vmem>>, %arg3: memref<8x128xbf16, #tpu.memory_space<vmem>>, %arg4: memref<4x128x128xbf16, #tpu.memory_space<vmem>>, %arg5: memref<8x128xf32, #tpu.memory_space<vmem>>, %arg6: memref<8x128xf32, #tpu.memory_space<vmem>>) attributes {dimension_semantics = [], scalar_prefetch = 0 : i64, scratch_operands = 0 : i64, tpu.core_type = #tpu.core_type<tc>} {
    %c0 = arith.constant 0 : index
    %c0_0 = arith.constant 0 : index
    %0 = vector.load %arg1[%c0, %c0_0] : memref<128x128xbf16, #tpu.memory_space<vmem>>, vector<128x128xbf16>
    %c0_1 = arith.constant 0 : index
    %c0_2 = arith.constant 0 : index
    %1 = vector.load %arg0[%c0_1, %c0_2] : memref<128x8xf32, #tpu.memory_space<vmem>>, vector<128x8xf32>
    %2 = arith.truncf %1 : vector<128x8xf32> to vector<128x8xbf16>
    %c0_3 = arith.constant 0 : index
    %c0_4 = arith.constant 0 : index
    %3 = vector.load %arg5[%c0_3, %c0_4] : memref<8x128xf32, #tpu.memory_space<vmem>>, vector<8x128xf32>
    %cst = arith.constant dense<0.000000e+00> : vector<128x8xf32>
    %4 = tpu.matmul %0, %2, %cst {dimension_numbers = #tpu.dot_dimension_numbers<[1], [0], [0], [1], [0, 0, 1, 1], [], []>} : vector<128x128xbf16>, vector<128x8xbf16>, vector<128x8xf32> -> vector<128x8xf32>
    %5 = arith.truncf %4 : vector<128x8xf32> to vector<128x8xbf16>
    %c0_5 = arith.constant 0 : index
    %c0_6 = arith.constant 0 : index
    %6 = vector.load %arg3[%c0_5, %c0_6] : memref<8x128xbf16, #tpu.memory_space<vmem>>, vector<8x128xbf16>
    %cst_7 = arith.constant dense<0.000000e+00> : vector<128x128xf32>
    %7 = tpu.matmul %5, %6, %cst_7 {dimension_numbers = #tpu.dot_dimension_numbers<[1], [0], [0], [1], [0, 0, 1, 1], [], []>} : vector<128x8xbf16>, vector<8x128xbf16>, vector<128x128xf32> -> vector<128x128xf32>
    %8 = vector.extract_strided_slice %3 {offsets = [0, 0], sizes = [1, 128], strides = [1, 1]} : vector<8x128xf32> to vector<1x128xf32>
    %9 = vector.broadcast %8 : vector<1x128xf32> to vector<128x128xf32>
    %10 = arith.addf %7, %9 : vector<128x128xf32>
    %cst_8 = arith.constant 0.000000e+00 : f32
    %11 = vector.broadcast %cst_8 : f32 to vector<128x128xf32>
    %12 = arith.maximumf %10, %11 : vector<128x128xf32>
    %c0_9 = arith.constant 0 : index
    %c0_10 = arith.constant 0 : index
    %c0_11 = arith.constant 0 : index
    %13 = vector.load %arg4[%c0_9, %c0_10, %c0_11] : memref<4x128x128xbf16, #tpu.memory_space<vmem>>, vector<1x128x128xbf16>
    %14 = vector.shape_cast %13 : vector<1x128x128xbf16> to vector<128x128xbf16>
    %15 = vector.extract_strided_slice %3 {offsets = [1, 0], sizes = [1, 128], strides = [1, 1]} : vector<8x128xf32> to vector<1x128xf32>
    %16 = arith.truncf %12 : vector<128x128xf32> to vector<128x128xbf16>
    %cst_12 = arith.constant dense<0.000000e+00> : vector<128x128xf32>
    %17 = tpu.matmul %16, %14, %cst_12 {dimension_numbers = #tpu.dot_dimension_numbers<[1], [0], [0], [1], [0, 0, 1, 1], [], []>} : vector<128x128xbf16>, vector<128x128xbf16>, vector<128x128xf32> -> vector<128x128xf32>
    %18 = arith.truncf %17 : vector<128x128xf32> to vector<128x128xbf16>
    %cst_13 = arith.constant dense<0.000000e+00> : vector<128x128xf32>
    %19 = tpu.matmul %0, %18, %cst_13 {dimension_numbers = #tpu.dot_dimension_numbers<[1], [0], [0], [1], [0, 0, 1, 1], [], []>} : vector<128x128xbf16>, vector<128x128xbf16>, vector<128x128xf32> -> vector<128x128xf32>
    %20 = vector.broadcast %15 : vector<1x128xf32> to vector<128x128xf32>
    %21 = arith.addf %19, %20 : vector<128x128xf32>
    %cst_14 = arith.constant 0.000000e+00 : f32
    %22 = vector.broadcast %cst_14 : f32 to vector<128x128xf32>
    %23 = arith.maximumf %21, %22 : vector<128x128xf32>
    %c1 = arith.constant 1 : index
    %c0_15 = arith.constant 0 : index
    %c0_16 = arith.constant 0 : index
    %24 = vector.load %arg4[%c1, %c0_15, %c0_16] : memref<4x128x128xbf16, #tpu.memory_space<vmem>>, vector<1x128x128xbf16>
    %25 = vector.shape_cast %24 : vector<1x128x128xbf16> to vector<128x128xbf16>
    %26 = vector.extract_strided_slice %3 {offsets = [2, 0], sizes = [1, 128], strides = [1, 1]} : vector<8x128xf32> to vector<1x128xf32>
    %27 = arith.truncf %23 : vector<128x128xf32> to vector<128x128xbf16>
    %cst_17 = arith.constant dense<0.000000e+00> : vector<128x128xf32>
    %28 = tpu.matmul %27, %25, %cst_17 {dimension_numbers = #tpu.dot_dimension_numbers<[1], [0], [0], [1], [0, 0, 1, 1], [], []>} : vector<128x128xbf16>, vector<128x128xbf16>, vector<128x128xf32> -> vector<128x128xf32>
    %29 = arith.truncf %28 : vector<128x128xf32> to vector<128x128xbf16>
    %cst_18 = arith.constant dense<0.000000e+00> : vector<128x128xf32>
    %30 = tpu.matmul %0, %29, %cst_18 {dimension_numbers = #tpu.dot_dimension_numbers<[1], [0], [0], [1], [0, 0, 1, 1], [], []>} : vector<128x128xbf16>, vector<128x128xbf16>, vector<128x128xf32> -> vector<128x128xf32>
    %31 = vector.broadcast %26 : vector<1x128xf32> to vector<128x128xf32>
    %32 = arith.addf %30, %31 : vector<128x128xf32>
    %cst_19 = arith.constant 0.000000e+00 : f32
    %33 = vector.broadcast %cst_19 : f32 to vector<128x128xf32>
    %34 = arith.maximumf %32, %33 : vector<128x128xf32>
    %c0_20 = arith.constant 0 : index
    %c0_21 = arith.constant 0 : index
    %35 = vector.load %arg2[%c0_20, %c0_21] : memref<8x128xf32, #tpu.memory_space<vmem>>, vector<8x128xf32>
    %36 = arith.truncf %35 : vector<8x128xf32> to vector<8x128xbf16>
    %37 = arith.truncf %34 : vector<128x128xf32> to vector<128x128xbf16>
    %cst_22 = arith.constant dense<0.000000e+00> : vector<8x128xf32>
    %38 = tpu.matmul %36, %37, %cst_22 {dimension_numbers = #tpu.dot_dimension_numbers<[1], [0], [0], [1], [0, 0, 1, 1], [], []>} : vector<8x128xbf16>, vector<128x128xbf16>, vector<8x128xf32> -> vector<8x128xf32>
    %39 = arith.truncf %38 : vector<8x128xf32> to vector<8x128xbf16>
    %c2 = arith.constant 2 : index
    %c0_23 = arith.constant 0 : index
    %c0_24 = arith.constant 0 : index
    %40 = vector.load %arg4[%c2, %c0_23, %c0_24] : memref<4x128x128xbf16, #tpu.memory_space<vmem>>, vector<1x128x128xbf16>
    %41 = vector.shape_cast %40 : vector<1x128x128xbf16> to vector<128x128xbf16>
    %cst_25 = arith.constant dense<0.000000e+00> : vector<8x128xf32>
    %42 = tpu.matmul %39, %41, %cst_25 {dimension_numbers = #tpu.dot_dimension_numbers<[1], [0], [0], [1], [0, 0, 1, 1], [], []>} : vector<8x128xbf16>, vector<128x128xbf16>, vector<8x128xf32> -> vector<8x128xf32>
    %43 = vector.extract_strided_slice %3 {offsets = [3, 0], sizes = [1, 128], strides = [1, 1]} : vector<8x128xf32> to vector<1x128xf32>
    %44 = vector.broadcast %43 : vector<1x128xf32> to vector<8x128xf32>
    %45 = arith.addf %42, %44 : vector<8x128xf32>
    %cst_26 = arith.constant 0.000000e+00 : f32
    %46 = vector.broadcast %cst_26 : f32 to vector<8x128xf32>
    %47 = arith.maximumf %45, %46 : vector<8x128xf32>
    %48 = arith.truncf %47 : vector<8x128xf32> to vector<8x128xbf16>
    %c3 = arith.constant 3 : index
    %c0_27 = arith.constant 0 : index
    %c0_28 = arith.constant 0 : index
    %49 = vector.load %arg4[%c3, %c0_27, %c0_28] : memref<4x128x128xbf16, #tpu.memory_space<vmem>>, vector<1x128x128xbf16>
    %50 = vector.shape_cast %49 : vector<1x128x128xbf16> to vector<128x128xbf16>
    %cst_29 = arith.constant dense<0.000000e+00> : vector<8x128xf32>
    %51 = tpu.matmul %48, %50, %cst_29 {dimension_numbers = #tpu.dot_dimension_numbers<[1], [0], [0], [1], [0, 0, 1, 1], [], []>} : vector<8x128xbf16>, vector<128x128xbf16>, vector<8x128xf32> -> vector<8x128xf32>
    %52 = vector.extract_strided_slice %3 {offsets = [4, 0], sizes = [1, 128], strides = [1, 1]} : vector<8x128xf32> to vector<1x128xf32>
    %53 = vector.broadcast %52 : vector<1x128xf32> to vector<8x128xf32>
    %54 = arith.addf %51, %53 : vector<8x128xf32>
    %55 = tpu.iota {dimensions = array<i32: 1>} : vector<8x128xi32>
    %c2_i32 = arith.constant 2 : i32
    %56 = vector.broadcast %c2_i32 : i32 to vector<8x128xi32>
    %57 = arith.cmpi slt, %55, %56 : vector<8x128xi32>
    %cst_30 = arith.constant -1.000000e+30 : f32
    %58 = vector.broadcast %cst_30 : f32 to vector<8x128xf32>
    %59 = arith.select %57, %54, %58 : vector<8x128xi1>, vector<8x128xf32>
    %cst_31 = arith.constant dense<0xFF800000> : vector<8xf32>
    %60 = vector.multi_reduction <maximumf>, %59, %cst_31 [1] : vector<8x128xf32> to vector<8xf32>
    %61 = vector.shape_cast %60 : vector<8xf32> to vector<8x1xf32>
    %62 = vector.broadcast %61 : vector<8x1xf32> to vector<8x128xf32>
    %63 = arith.subf %59, %62 : vector<8x128xf32>
    %64 = math.exp %63 : vector<8x128xf32>
    %cst_32 = arith.constant 0.000000e+00 : f32
    %65 = vector.broadcast %cst_32 : f32 to vector<8x128xf32>
    %66 = arith.select %57, %64, %65 : vector<8x128xi1>, vector<8x128xf32>
    %cst_33 = arith.constant dense<0.000000e+00> : vector<8xf32>
    %67 = vector.multi_reduction <add>, %66, %cst_33 [1] : vector<8x128xf32> to vector<8xf32>
    %68 = vector.shape_cast %67 : vector<8xf32> to vector<8x1xf32>
    %69 = math.log %68 : vector<8x1xf32>
    %70 = vector.broadcast %69 : vector<8x1xf32> to vector<8x128xf32>
    %71 = arith.subf %63, %70 : vector<8x128xf32>
    %c0_34 = arith.constant 0 : index
    %c0_35 = arith.constant 0 : index
    %72 = vector.load %arg6[%c0_34, %c0_35] : memref<8x128xf32, #tpu.memory_space<vmem>>, vector<8x128xf32>
    tpu.vector_store %arg6[%c0_34, %c0_35], %71 {strides = array<i32>} : memref<8x128xf32, #tpu.memory_space<vmem>>, vector<8x128xf32>,
    return
  }
}

</mosaic_0001>

<bundles_post_ra>
// kernel: tpu_custom_call.1
= control target key start
LH: loop header
LB: loop body
LE: loop exit
PB: predicated region body
PF: predicated region fallthrough
CT: control target
= control target key end

     0   :  { %11 = vsyncpa [#allocation3], 0  ;;  %s2012_s0 = inlined_call_operand.vmem [shape: f32[128,8], index: 0, kind: input, shape index: {}]   ;;  %s2013_s1 = inlined_call_operand.vmem [shape: bf16[128,128], index: 1, kind: input, shape index: {}]   ;;  %s2014_s2 = inlined_call_operand.vmem [shape: f32[8,128], index: 2, kind: input, shape index: {}]   ;;  %s2015_s3 = inlined_call_operand.vmem [shape: bf16[8,128], index: 3, kind: input, shape index: {}]   ;;  %s2016_s4 = inlined_call_operand.hbm [shape: bf16[4,128,128], index: 4, kind: input, shape index: {}]   ;;  %s2017_s5 = inlined_call_operand.vmem [shape: f32[8,128], index: 5, kind: input, shape index: {}]   ;;  %s2018_s6 = inlined_call_operand.hbm [shape: f32[8,128], index: 6, kind: output, shape index: {}]  }
   0x1   :  { %12 = vsyncpa [#allocation4], 0  ;;  %s1772_s21 = smov [#allocation2]   ;;  %s1724_s25 = scalar_lea.hbm %s2016_s4, 4096 }
   0x2   :  { %s26_s22 = sshll.u32 %s1772_s21, 4  ;;  %p1725_p0 = scmp.ne.s32.totalorder %s2016_s4, %s1724_s25  ;;  %s27_s22 = int_to_ptr.vmem [resolvable:$true] %s26_s22 }
   0x3   :  { %p1728_p1 = scmp.lt.u32.totalorder %s1724_s25, %s2016_s4 }
   0x5   :  { %p1730_p2 = pnand %p1728_p1, %p1725_p0 }
   0x7   :  { %1733 = shalt.err (!%p1730_p2)
}
   0x8   :  { %s1734_s30 = scalar_lea.vmem %s27_s22, 4096  ;;  %p1739_p4 = scmp.lt.s32.totalorder %s27_s22, %s27_s22 }
   0x9   :  { %p1735_p3 = scmp.ne.s32.totalorder %s27_s22, %s1734_s30  ;;  %p1740_p5 = scmp.lt.s32.totalorder %s1734_s30, %s1734_s30 }
   0xb   :  { %p1741_p6 = por %p1740_p5, %p1739_p4 }
   0xd   :  { %p1742_p7 = pnand %p1741_p6, %p1735_p3 }
   0xf   :  { %1745 = shalt.err (!%p1742_p7)
}
  0x10   :  { %s1773_s7 = smov 64   ;;  %s1774_s8 = smov 4  }
  0x11   :  { %32 = dma.hbm_to_vmem [thread:$0]  %s2016_s4, 4096, %s27_s22, [#allocation3], %s1773_s7, %s1773_s7, %s1774_s8  }
  0x12   :  { %1768 = dma.done.wait [#allocation3], 4096  }
  0x13   :  { %1769 = vsyncadd [#allocation3], 4294963200  ;;  %v55_v0 = vld [vmem:[%s2012_s0] sm:$0xff]  ;;  %v56_v1 = vld [vmem:[%s2012_s0 + $0x8] sm:$0xff]  ;;  %vm263_vm0 = vcmask 1043456   ;;  %vm238_vm1 = vcmask 64512  }
  0x14   :  { %v57_v2 = vld [vmem:[%s2012_s0 + $0x10] sm:$0xff]  ;;  %v71_v3 = vpack.c.bf16 %v56_v1, %v55_v0  ;;  %v58_v4 = vld [vmem:[%s2012_s0 + $0x18] sm:$0xff]  ;;  %v59_v6 = vld [vmem:[%s2012_s0 + $0x20] sm:$0xff]  ;;  %vm1776_vm2 = vmmov 0  }
  0x15   :  { %v72_v5 = vpack.c.bf16 %v58_v4, %v57_v2  ;;  %v60_v7 = vld [vmem:[%s2012_s0 + $0x28] sm:$0xff]  ;;  %v61_v8 = vld [vmem:[%s2012_s0 + $0x30] sm:$0xff]  ;;  %v62_v10 = vld [vmem:[%s2012_s0 + $0x38] sm:$0xff]  ;;  %v234_v2 = vlaneseq }
  0x16   :  { %1435 = vmatprep.subr.bf16.mxu0 %v71_v3  ;;  %v73_v9 = vpack.c.bf16 %v60_v7, %v59_v6  ;;  %v1852_v11 = vld [vmem:[%s2013_s1] sm:$0xff]   ;;  %v74_v12 = vpack.c.bf16 %v62_v10, %v61_v8  ;;  %v64_v14 = vld [vmem:[%s2012_s0 + $0x48] sm:$0xff]  ;;  %v65_v15 = vld [vmem:[%s2012_s0 + $0x50] sm:$0xff] }
  0x17   :  { %1436 = vmatpush3.bf16.msra.mxu0 %v71_v3  ;;  %1451 = vmatprep.mubr.bf16.mxu0 %v1852_v11  ;;  %v63_v13 = vld [vmem:[%s2012_s0 + $0x40] sm:$0xff]  ;;  %v66_v17 = vld [vmem:[%s2012_s0 + $0x58] sm:$0xff]  ;;  %v68_v19 = vld [vmem:[%s2012_s0 + $0x68] sm:$0xff]  ;;  %v1934_v3 = vshrl.u32 %v234_v2, 7 }
  0x18   :  { %1437 = vmatprep.subr.bf16.mxu0 %v72_v5  ;;  %v75_v16 = vpack.c.bf16 %v64_v14, %v63_v13  ;;  %v67_v18 = vld [vmem:[%s2012_s0 + $0x60] sm:$0xff]  ;;  %v76_v20 = vpack.c.bf16 %v66_v17, %v65_v15  ;;  %v69_v21 = vld [vmem:[%s2012_s0 + $0x70] sm:$0xff]  ;;  %v70_v22 = vld [vmem:[%s2012_s0 + $0x78] sm:$0xff] }
  0x19   :  { %v77_v23 = vpack.c.bf16 %v68_v19, %v67_v18  ;;  %v78_v24 = vpack.c.bf16 %v70_v22, %v69_v21  ;;  %v1882_v25 = vld [vmem:[%s2013_s1 + $0x8] sm:$0xff]   ;;  %v1887_v26 = vld [vmem:[%s2013_s1 + $0x10] sm:$0xff]   ;;  %v1894_v27 = vld [vmem:[%s2013_s1 + $0x18] sm:$0xff]   ;;  %v236_v4 = vsub.s32 0, %v1934_v3 }
  0x1a   :  { %v1899_v28 = vld [vmem:[%s2013_s1 + $0x20] sm:$0xff]   ;;  %v1906_v29 = vld [vmem:[%s2013_s1 + $0x28] sm:$0xff]   ;;  %v1911_v30 = vld [vmem:[%s2013_s1 + $0x30] sm:$0xff]  }
  0x1b   :  { %1438 = vmatpush3.bf16.msra.mxu0 %v72_v5  ;;  %v1918_v31 = vld [vmem:[%s2013_s1 + $0x38] sm:$0xff]   ;;  %v233_v32 = vld [vmem:[%s2015_s3] sm:$0xf]  ;;  %v1689_v41 = vld [vmem:[#allocation2 + $0x8] sm:$0xff]  }
  0x1c   :  { %1439 = vmatprep.subr.bf16.mxu0 %v73_v9  ;;  %1673 = vmatprep.subr.msk.bf16.mxu1 %vm263_vm0, %v233_v32  ;;  %v265_v33 = vsel %vm263_vm0, %v233_v32, 0  ;;  %v1688_v34 = vld [vmem:[#allocation2] sm:$0xff]   ;;  %v1690_v44 = vld [vmem:[#allocation2 + $0x10] sm:$0xff]   ;;  %v1691_v49 = vld [vmem:[#allocation2 + $0x18] sm:$0xff]  }
  0x1d   :  { %1468 = vmatpush3.bf16.msra.mxu1 %v265_v33  ;;  %v1692_v52 = vld [vmem:[#allocation2 + $0x20] sm:$0xff]   ;;  %v1693_v57 = vld [vmem:[#allocation2 + $0x28] sm:$0xff]   ;;  %v1694_v0 = vld [vmem:[#allocation2 + $0x30] sm:$0xff]  }
  0x1e   :  { %1485 = vmatprep.subr.bf16.mxu1 %v1688_v34  ;;  %v1695_v1 = vld [vmem:[#allocation2 + $0x38] sm:$0xff]   ;;  %v1940_v5 = vld [vmem:[%s2017_s5] sm:$0xff] }
  0x1f   :  { %1440 = vmatpush3.bf16.msra.mxu0 %v73_v9  ;;  %v237_v6 = vrot.slane %v1940_v5, %v236_v4 }
  0x20   :  { %1441 = vmatprep.subr.bf16.mxu0 %v74_v12 }
  0x23   :  { %1442 = vmatpush3.bf16.msra.mxu0 %v74_v12 }
  0x24   :  { %1443 = vmatprep.subr.bf16.mxu0 %v75_v16 }
  0x27   :  { %1444 = vmatpush3.bf16.msra.mxu0 %v75_v16 }
  0x28   :  { %1445 = vmatprep.subr.bf16.mxu0 %v76_v20 }
  0x2b   :  { %1446 = vmatpush3.bf16.msra.mxu0 %v76_v20 }
  0x2c   :  { %1447 = vmatprep.subr.bf16.mxu0 %v77_v23 }
  0x2f   :  { %1448 = vmatpush3.bf16.msra.mxu0 %v77_v23 }
  0x30   :  { %1449 = vmatprep.subr.bf16.mxu0 %v78_v24 }
  0x33   :  { %1450 = vmatpush3.bf16.msra.mxu0 %v78_v24 }
  0x36   :  { %1452 = vmatmul.mubr.bf16.vlgmr.msra.gmra.mrb[0].mxu0 %v1882_v25 }
  0x37   :  { %1455 = vmatprep.mubr.bf16.mxu0 %v1887_v26 }
  0x3e   :  { %1456 = vmatmul.mubr.bf16.gmra.mrb[4].mxu0 %v1894_v27 }
  0x3f   :  { %1459 = vmatprep.mubr.bf16.mxu0 %v1899_v28 }
  0x46   :  { %1460 = vmatmul.mubr.bf16.gmra.mrb[8].mxu0 %v1906_v29 }
  0x47   :  { %1463 = vmatprep.mubr.bf16.mxu0 %v1911_v30 }
  0x4e   :  { %1464 = vmatmul.mubr.bf16.gmra.mrb[12].mxu0 %v1918_v31 }
  0x4f   :  { %1533 = vmatprep.mubr.bf16.mxu0 %v1852_v11 }
 0x109   :  { %v1453_v35 = vpop.f32.mrb[0].mxu0 }
 0x10a   :  { %v162_v36 = vpop.f32.mrb[1].mxu0 }
 0x10b   :  { %v1454_v37 = vpop.f32.mrb[2].mxu0 }
 0x10c   :  { %v226_v38 = vpack.c.bf16 %v1454_v37, %v1453_v35  ;;  %v165_v39 = vpop.f32.mrb[3].mxu0 }
 0x10d   :  { %v225_v40 = vpack.c.bf16 %v165_v39, %v162_v36 }
 0x10f   :  { %1469 = vmatprep.mubr.msk.bf16.mxu1 %vm238_vm1, %v225_v40 }
 0x110   :  { %1470 = vmatmul.mubr.msk.bf16.vlgmr.msra.gmra.mrb[0].mxu1 %vm238_vm1, %v226_v38 }
 0x111   :  { %v1457_v42 = vpop.f32.mrb[4].mxu0  ;;  %1486 = vmatpush3.bf16.msra.mxu1 %v1688_v34 }
 0x112   :  { %v178_v43 = vpop.f32.mrb[5].mxu0  ;;  %1487 = vmatprep.subr.bf16.mxu1 %v1689_v41 }
 0x113   :  { %v1458_v45 = vpop.f32.mrb[6].mxu0 }
 0x114   :  { %v228_v46 = vpack.c.bf16 %v1458_v45, %v1457_v42  ;;  %v181_v47 = vpop.f32.mrb[7].mxu0 }
 0x115   :  { %v227_v48 = vpack.c.bf16 %v181_v47, %v178_v43  ;;  %1488 = vmatpush3.bf16.msra.mxu1 %v1689_v41 }
 0x116   :  { %1489 = vmatprep.subr.bf16.mxu1 %v1690_v44 }
 0x117   :  { %1473 = vmatprep.mubr.msk.bf16.mxu1 %vm238_vm1, %v227_v48 }
 0x118   :  { %1474 = vmatmul.mubr.msk.bf16.gmra.mrb[4].mxu1 %vm238_vm1, %v228_v46 }
 0x119   :  { %v1461_v50 = vpop.f32.mrb[8].mxu0  ;;  %1490 = vmatpush3.bf16.msra.mxu1 %v1690_v44 }
 0x11a   :  { %v194_v51 = vpop.f32.mrb[9].mxu0  ;;  %1491 = vmatprep.subr.bf16.mxu1 %v1691_v49 }
 0x11b   :  { %v1462_v53 = vpop.f32.mrb[10].mxu0 }
 0x11c   :  { %v230_v54 = vpack.c.bf16 %v1462_v53, %v1461_v50  ;;  %v197_v55 = vpop.f32.mrb[11].mxu0 }
 0x11d   :  { %v229_v56 = vpack.c.bf16 %v197_v55, %v194_v51  ;;  %1492 = vmatpush3.bf16.msra.mxu1 %v1691_v49 }
 0x11e   :  { %1493 = vmatprep.subr.bf16.mxu1 %v1692_v52 }
 0x11f   :  { %1477 = vmatprep.mubr.msk.bf16.mxu1 %vm238_vm1, %v229_v56 }
 0x120   :  { %1478 = vmatmul.mubr.msk.bf16.gmra.mrb[8].mxu1 %vm238_vm1, %v230_v54 }
 0x121   :  { %v1465_v58 = vpop.f32.mrb[12].mxu0  ;;  %1494 = vmatpush3.bf16.msra.mxu1 %v1692_v52 }
 0x122   :  { %v210_v59 = vpop.f32.mrb[13].mxu0  ;;  %1495 = vmatprep.subr.bf16.mxu1 %v1693_v57 }
 0x123   :  { %v1466_v60 = vpop.f32.mrb[14].mxu0 }
 0x124   :  { %v232_v61 = vpack.c.bf16 %v1466_v60, %v1465_v58  ;;  %v213_v62 = vpop.f32.mrb[15].mxu0 }
 0x125   :  { %v231_v63 = vpack.c.bf16 %v213_v62, %v210_v59  ;;  %1496 = vmatpush3.bf16.msra.mxu1 %v1693_v57 }
 0x126   :  { %1497 = vmatprep.subr.bf16.mxu1 %v1694_v0 }
 0x127   :  { %1481 = vmatprep.mubr.msk.bf16.mxu1 %vm238_vm1, %v231_v63 }
 0x128   :  { %1482 = vmatmul.mubr.msk.bf16.gmra.mrb[12].mxu1 %vm238_vm1, %v232_v61 }
 0x129   :  { %1498 = vmatpush3.bf16.msra.mxu1 %v1694_v0 }
 0x12a   :  { %1499 = vmatprep.subr.bf16.mxu1 %v1695_v1 }
 0x12d   :  { %1500 = vmatpush3.bf16.msra.mxu1 %v1695_v1 }
 0x1e3   :  { %v1471_v7 = vpop.f32.mrb[0].mxu1 }
 0x1e4   :  { %v310_v8 = vadd.f32 %v1471_v7, %v237_v6  ;;  %v301_v9 = vpop.f32.mrb[1].mxu1 }
 0x1e5   :  { %v302_v10 = vadd.f32 %v301_v9, %v237_v6  ;;  %v1472_v12 = vpop.f32.mrb[2].mxu1 }
 0x1e6   :  { %v313_v13 = vadd.f32 %v1472_v12, %v237_v6  ;;  %v304_v14 = vpop.f32.mrb[3].mxu1  ;;  %v366_v16 = vmax.f32 %v310_v8, 0.0  ;;  %v1696_v12 = vld [vmem:[#allocation2 + $0x40] sm:$0xff]  }
 0x1e7   :  { %v305_v15 = vadd.f32 %v304_v14, %v237_v6  ;;  %v364_v18 = vmax.f32 %v302_v10, 0.0  ;;  %1549 = vmatprep.subr.bf16.mxu1 %v1696_v12  ;;  %v1698_v14 = vld [vmem:[#allocation2 + $0x50] sm:$0xff]  }
 0x1e8   :  { %v367_v17 = vmax.f32 %v313_v13, 0.0  ;;  %v1697_v13 = vld [vmem:[#allocation2 + $0x48] sm:$0xff]  }
 0x1e9   :  { %v365_v19 = vmax.f32 %v305_v15, 0.0  ;;  %v1699_v15 = vld [vmem:[#allocation2 + $0x58] sm:$0xff]  }
 0x1ea   :  { %v397_v20 = vpack.c.bf16 %v367_v17, %v366_v16  ;;  %v1701_v16 = vld [vmem:[#allocation2 + $0x68] sm:$0xff]  }
 0x1eb   :  { %v396_v21 = vpack.c.bf16 %v365_v19, %v364_v18  ;;  %v1475_v22 = vpop.f32.mrb[4].mxu1 }
 0x1ec   :  { %v326_v23 = vadd.f32 %v1475_v22, %v237_v6  ;;  %v317_v24 = vpop.f32.mrb[5].mxu1 }
 0x1ed   :  { %v318_v32 = vadd.f32 %v317_v24, %v237_v6  ;;  %v1476_v33 = vpop.f32.mrb[6].mxu1  ;;  %1501 = vmatprep.mubr.bf16.mxu1 %v396_v21 }
 0x1ee   :  { %v329_v34 = vadd.f32 %v1476_v33, %v237_v6  ;;  %v320_v35 = vpop.f32.mrb[7].mxu1  ;;  %1502 = vmatmul.mubr.bf16.vlgmr.msra.gmra.mrb[16].mxu1 %v397_v20  ;;  %v370_v37 = vmax.f32 %v326_v23, 0.0 }
 0x1ef   :  { %v321_v36 = vadd.f32 %v320_v35, %v237_v6  ;;  %v368_v39 = vmax.f32 %v318_v32, 0.0  ;;  %1550 = vmatpush3.bf16.msra.mxu1 %v1696_v12 }
 0x1f0   :  { %v371_v38 = vmax.f32 %v329_v34, 0.0  ;;  %1551 = vmatprep.subr.bf16.mxu1 %v1697_v13 }
 0x1f1   :  { %v369_v40 = vmax.f32 %v321_v36, 0.0 }
 0x1f2   :  { %v399_v41 = vpack.c.bf16 %v371_v38, %v370_v37 }
 0x1f3   :  { %v398_v42 = vpack.c.bf16 %v369_v40, %v368_v39  ;;  %v1479_v43 = vpop.f32.mrb[8].mxu1  ;;  %1552 = vmatpush3.bf16.msra.mxu1 %v1697_v13 }
 0x1f4   :  { %v342_v44 = vadd.f32 %v1479_v43, %v237_v6  ;;  %v333_v45 = vpop.f32.mrb[9].mxu1  ;;  %1553 = vmatprep.subr.bf16.mxu1 %v1698_v14 }
 0x1f5   :  { %v334_v46 = vadd.f32 %v333_v45, %v237_v6  ;;  %v1480_v47 = vpop.f32.mrb[10].mxu1  ;;  %1505 = vmatprep.mubr.bf16.mxu1 %v398_v42 }
 0x1f6   :  { %v345_v48 = vadd.f32 %v1480_v47, %v237_v6  ;;  %v336_v49 = vpop.f32.mrb[11].mxu1  ;;  %1506 = vmatmul.mubr.bf16.gmra.mrb[20].mxu1 %v399_v41  ;;  %v374_v51 = vmax.f32 %v342_v44, 0.0 }
 0x1f7   :  { %v337_v50 = vadd.f32 %v336_v49, %v237_v6  ;;  %v372_v53 = vmax.f32 %v334_v46, 0.0  ;;  %1554 = vmatpush3.bf16.msra.mxu1 %v1698_v14  ;;  %v1703_v49 = vld [vmem:[#allocation2 + $0x78] sm:$0xff]  }
 0x1f8   :  { %v375_v52 = vmax.f32 %v345_v48, 0.0  ;;  %1555 = vmatprep.subr.bf16.mxu1 %v1699_v15  ;;  %v1702_v48 = vld [vmem:[#allocation2 + $0x70] sm:$0xff]  }
 0x1f9   :  { %v373_v54 = vmax.f32 %v337_v50, 0.0  ;;  %v559_v50 = vsub.s32 1, %v1934_v3 }
 0x1fa   :  { %v401_v55 = vpack.c.bf16 %v375_v52, %v374_v51 }
 0x1fb   :  { %v400_v56 = vpack.c.bf16 %v373_v54, %v372_v53  ;;  %v1483_v57 = vpop.f32.mrb[12].mxu1  ;;  %1556 = vmatpush3.bf16.msra.mxu1 %v1699_v15  ;;  %v560_v51 = vrot.slane %v1940_v5, %v559_v50 }
 0x1fc   :  { %v358_v58 = vadd.f32 %v1483_v57, %v237_v6  ;;  %v349_v59 = vpop.f32.mrb[13].mxu1 }
 0x1fd   :  { %v350_v60 = vadd.f32 %v349_v59, %v237_v6  ;;  %v1484_v61 = vpop.f32.mrb[14].mxu1  ;;  %1509 = vmatprep.mubr.bf16.mxu1 %v400_v56 }
 0x1fe   :  { %v361_v62 = vadd.f32 %v1484_v61, %v237_v6  ;;  %v352_v63 = vpop.f32.mrb[15].mxu1  ;;  %1510 = vmatmul.mubr.bf16.gmra.mrb[24].mxu1 %v401_v55  ;;  %v378_v1 = vmax.f32 %v358_v58, 0.0 }
 0x1ff   :  { %v353_v0 = vadd.f32 %v352_v63, %v237_v6  ;;  %v376_v7 = vmax.f32 %v350_v60, 0.0  ;;  %v1700_v6 = vld [vmem:[#allocation2 + $0x60] sm:$0xff]  }
 0x200   :  { %v379_v4 = vmax.f32 %v361_v62, 0.0  ;;  %1557 = vmatprep.subr.bf16.mxu1 %v1700_v6 }
 0x201   :  { %v377_v8 = vmax.f32 %v353_v0, 0.0  ;;  %1558 = vmatpush3.bf16.msra.mxu1 %v1700_v6 }
 0x202   :  { %v403_v9 = vpack.c.bf16 %v379_v4, %v378_v1  ;;  %1559 = vmatprep.subr.bf16.mxu1 %v1701_v16 }
 0x203   :  { %v402_v10 = vpack.c.bf16 %v377_v8, %v376_v7 }
 0x205   :  { %1513 = vmatprep.mubr.bf16.mxu1 %v402_v10  ;;  %1560 = vmatpush3.bf16.msra.mxu1 %v1701_v16 }
 0x206   :  { %1514 = vmatmul.mubr.bf16.gmra.mrb[28].mxu1 %v403_v9  ;;  %1561 = vmatprep.subr.bf16.mxu1 %v1702_v48 }
 0x209   :  { %1562 = vmatpush3.bf16.msra.mxu1 %v1702_v48 }
 0x20a   :  { %1563 = vmatprep.subr.bf16.mxu1 %v1703_v49 }
 0x20d   :  { %1564 = vmatpush3.bf16.msra.mxu1 %v1703_v49 }
 0x2c1   :  { %v1503_v17 = vpop.f32.mrb[16].mxu1 }
 0x2c2   :  { %v486_v18 = vpop.f32.mrb[17].mxu1 }
 0x2c3   :  { %v1504_v19 = vpop.f32.mrb[18].mxu1 }
 0x2c4   :  { %v550_v20 = vpack.c.bf16 %v1504_v19, %v1503_v17  ;;  %v489_v21 = vpop.f32.mrb[19].mxu1 }
 0x2c5   :  { %v549_v22 = vpack.c.bf16 %v489_v21, %v486_v18 }
 0x2c7   :  { %1517 = vmatprep.subr.bf16.mxu0 %v549_v22 }
 0x2c8   :  { %1518 = vmatpush3.bf16.msra.mxu0 %v549_v22 }
 0x2c9   :  { %v1507_v23 = vpop.f32.mrb[20].mxu1  ;;  %1519 = vmatprep.subr.bf16.mxu0 %v550_v20 }
 0x2ca   :  { %v502_v24 = vpop.f32.mrb[21].mxu1 }
 0x2cb   :  { %v1508_v32 = vpop.f32.mrb[22].mxu1 }
 0x2cc   :  { %v552_v33 = vpack.c.bf16 %v1508_v32, %v1507_v23  ;;  %v505_v34 = vpop.f32.mrb[23].mxu1  ;;  %1520 = vmatpush3.bf16.msra.mxu0 %v550_v20 }
 0x2cd   :  { %v551_v35 = vpack.c.bf16 %v505_v34, %v502_v24 }
 0x2cf   :  { %1521 = vmatprep.subr.bf16.mxu0 %v551_v35 }
 0x2d0   :  { %1522 = vmatpush3.bf16.msra.mxu0 %v551_v35 }
 0x2d1   :  { %v1511_v36 = vpop.f32.mrb[24].mxu1  ;;  %1523 = vmatprep.subr.bf16.mxu0 %v552_v33 }
 0x2d2   :  { %v518_v37 = vpop.f32.mrb[25].mxu1 }
 0x2d3   :  { %v1512_v38 = vpop.f32.mrb[26].mxu1 }
 0x2d4   :  { %v554_v39 = vpack.c.bf16 %v1512_v38, %v1511_v36  ;;  %v521_v40 = vpop.f32.mrb[27].mxu1  ;;  %1524 = vmatpush3.bf16.msra.mxu0 %v552_v33 }
 0x2d5   :  { %v553_v41 = vpack.c.bf16 %v521_v40, %v518_v37 }
 0x2d7   :  { %1525 = vmatprep.subr.bf16.mxu0 %v553_v41 }
 0x2d8   :  { %1526 = vmatpush3.bf16.msra.mxu0 %v553_v41 }
 0x2d9   :  { %v1515_v42 = vpop.f32.mrb[28].mxu1  ;;  %1527 = vmatprep.subr.bf16.mxu0 %v554_v39 }
 0x2da   :  { %v534_v43 = vpop.f32.mrb[29].mxu1 }
 0x2db   :  { %v1516_v44 = vpop.f32.mrb[30].mxu1 }
 0x2dc   :  { %v556_v45 = vpack.c.bf16 %v1516_v44, %v1515_v42  ;;  %v537_v46 = vpop.f32.mrb[31].mxu1  ;;  %1528 = vmatpush3.bf16.msra.mxu0 %v554_v39 }
 0x2dd   :  { %v555_v47 = vpack.c.bf16 %v537_v46, %v534_v43 }
 0x2df   :  { %1529 = vmatprep.subr.bf16.mxu0 %v555_v47 }
 0x2e0   :  { %1530 = vmatpush3.bf16.msra.mxu0 %v555_v47 }
 0x2e1   :  { %1531 = vmatprep.subr.bf16.mxu0 %v556_v45 }
 0x2e4   :  { %1532 = vmatpush3.bf16.msra.mxu0 %v556_v45 }
 0x2e7   :  { %1534 = vmatmul.mubr.bf16.vlgmr.msra.gmra.mrb[16].mxu0 %v1882_v25 }
 0x2e8   :  { %1537 = vmatprep.mubr.bf16.mxu0 %v1887_v26 }
 0x2ef   :  { %1538 = vmatmul.mubr.bf16.gmra.mrb[20].mxu0 %v1894_v27 }
 0x2f0   :  { %1541 = vmatprep.mubr.bf16.mxu0 %v1899_v28 }
 0x2f7   :  { %1542 = vmatmul.mubr.bf16.gmra.mrb[24].mxu0 %v1906_v29 }
 0x2f8   :  { %1545 = vmatprep.mubr.bf16.mxu0 %v1911_v30 }
 0x2ff   :  { %1546 = vmatmul.mubr.bf16.gmra.mrb[28].mxu0 %v1918_v31 }
 0x300   :  { %1597 = vmatprep.mubr.bf16.mxu0 %v1852_v11 }
 0x3ba   :  { %v1535_v52 = vpop.f32.mrb[16].mxu0 }
 0x3bb   :  { %v604_v53 = vadd.f32 %v1535_v52, %v560_v51  ;;  %v595_v54 = vpop.f32.mrb[17].mxu0 }
 0x3bc   :  { %v596_v55 = vadd.f32 %v595_v54, %v560_v51  ;;  %v1536_v56 = vpop.f32.mrb[18].mxu0 }
 0x3bd   :  { %v607_v57 = vadd.f32 %v1536_v56, %v560_v51  ;;  %v598_v58 = vpop.f32.mrb[19].mxu0  ;;  %v660_v60 = vmax.f32 %v604_v53, 0.0 }
 0x3be   :  { %v599_v59 = vadd.f32 %v598_v58, %v560_v51  ;;  %v658_v61 = vmax.f32 %v596_v55, 0.0 }
 0x3bf   :  { %v661_v11 = vmax.f32 %v607_v57, 0.0 }
 0x3c0   :  { %v659_v62 = vmax.f32 %v599_v59, 0.0 }
 0x3c1   :  { %v692_v63 = vpack.c.bf16 %v661_v11, %v660_v60 }
 0x3c2   :  { %v691_v0 = vpack.c.bf16 %v659_v62, %v658_v61  ;;  %v1539_v1 = vpop.f32.mrb[20].mxu0 }
 0x3c3   :  { %v620_v4 = vadd.f32 %v1539_v1, %v560_v51  ;;  %v611_v7 = vpop.f32.mrb[21].mxu0 }
 0x3c4   :  { %v612_v8 = vadd.f32 %v611_v7, %v560_v51  ;;  %v1540_v9 = vpop.f32.mrb[22].mxu0  ;;  %1565 = vmatprep.mubr.bf16.mxu1 %v691_v0 }
 0x3c5   :  { %v623_v10 = vadd.f32 %v1540_v9, %v560_v51  ;;  %v614_v12 = vpop.f32.mrb[23].mxu0  ;;  %1566 = vmatmul.mubr.bf16.vlgmr.msra.gmra.mrb[32].mxu1 %v692_v63  ;;  %v664_v14 = vmax.f32 %v620_v4, 0.0 }
 0x3c6   :  { %v615_v13 = vadd.f32 %v614_v12, %v560_v51  ;;  %v662_v6 = vmax.f32 %v612_v8, 0.0 }
 0x3c7   :  { %v665_v15 = vmax.f32 %v623_v10, 0.0 }
 0x3c8   :  { %v663_v16 = vmax.f32 %v615_v13, 0.0 }
 0x3c9   :  { %v694_v17 = vpack.c.bf16 %v665_v15, %v664_v14 }
 0x3ca   :  { %v693_v18 = vpack.c.bf16 %v663_v16, %v662_v6  ;;  %v1543_v19 = vpop.f32.mrb[24].mxu0 }
 0x3cb   :  { %v636_v20 = vadd.f32 %v1543_v19, %v560_v51  ;;  %v627_v21 = vpop.f32.mrb[25].mxu0 }
 0x3cc   :  { %v628_v22 = vadd.f32 %v627_v21, %v560_v51  ;;  %v1544_v23 = vpop.f32.mrb[26].mxu0  ;;  %1569 = vmatprep.mubr.bf16.mxu1 %v693_v18  ;;  %v854_v18 = vsub.s32 2, %v1934_v3 }
 0x3cd   :  { %v639_v24 = vadd.f32 %v1544_v23, %v560_v51  ;;  %v630_v32 = vpop.f32.mrb[27].mxu0  ;;  %1570 = vmatmul.mubr.bf16.gmra.mrb[36].mxu1 %v694_v17  ;;  %v668_v34 = vmax.f32 %v636_v20, 0.0  ;;  %v1775_v17 = vmov 0.0  }
 0x3ce   :  { %v631_v33 = vadd.f32 %v630_v32, %v560_v51  ;;  %v666_v36 = vmax.f32 %v628_v22, 0.0  ;;  %1613 = vmatprep.subr.bf16.mxu1 %v1775_v17  ;;  %v855_v19 = vrot.slane %v1940_v5, %v854_v18  ;;  %v1711_v18 = vld [vmem:[#allocation2 + $0xb8] sm:$0xff]  }
 0x3cf   :  { %v669_v35 = vmax.f32 %v639_v24, 0.0 }
 0x3d0   :  { %v667_v37 = vmax.f32 %v631_v33, 0.0 }
 0x3d1   :  { %v696_v38 = vpack.c.bf16 %v669_v35, %v668_v34 }
 0x3d2   :  { %v695_v39 = vpack.c.bf16 %v667_v37, %v666_v36  ;;  %v1547_v40 = vpop.f32.mrb[28].mxu0 }
 0x3d3   :  { %v652_v41 = vadd.f32 %v1547_v40, %v560_v51  ;;  %v643_v42 = vpop.f32.mrb[29].mxu0 }
 0x3d4   :  { %v644_v43 = vadd.f32 %v643_v42, %v560_v51  ;;  %v1548_v44 = vpop.f32.mrb[30].mxu0  ;;  %1573 = vmatprep.mubr.bf16.mxu1 %v695_v39 }
 0x3d5   :  { %v655_v45 = vadd.f32 %v1548_v44, %v560_v51  ;;  %v646_v46 = vpop.f32.mrb[31].mxu0  ;;  %1574 = vmatmul.mubr.bf16.gmra.mrb[40].mxu1 %v696_v38  ;;  %v672_v48 = vmax.f32 %v652_v41, 0.0 }
 0x3d6   :  { %v647_v47 = vadd.f32 %v646_v46, %v560_v51  ;;  %v670_v50 = vmax.f32 %v644_v43, 0.0 }
 0x3d7   :  { %v673_v49 = vmax.f32 %v655_v45, 0.0 }
 0x3d8   :  { %v671_v52 = vmax.f32 %v647_v47, 0.0 }
 0x3d9   :  { %v698_v53 = vpack.c.bf16 %v673_v49, %v672_v48 }
 0x3da   :  { %v697_v54 = vpack.c.bf16 %v671_v52, %v670_v50 }
 0x3dc   :  { %1577 = vmatprep.mubr.bf16.mxu1 %v697_v54 }
 0x3dd   :  { %1578 = vmatmul.mubr.bf16.gmra.mrb[44].mxu1 %v698_v53 }
 0x3de   :  { %1629 = vmatprep.mubr.msk.bf16.mxu1 %vm1776_vm2, %v1775_v17 }
 0x498   :  { %v1567_v55 = vpop.f32.mrb[32].mxu1 }
 0x499   :  { %v781_v56 = vpop.f32.mrb[33].mxu1 }
 0x49a   :  { %v1568_v57 = vpop.f32.mrb[34].mxu1 }
 0x49b   :  { %v845_v58 = vpack.c.bf16 %v1568_v57, %v1567_v55  ;;  %v784_v59 = vpop.f32.mrb[35].mxu1 }
 0x49c   :  { %v844_v60 = vpack.c.bf16 %v784_v59, %v781_v56 }
 0x49e   :  { %1581 = vmatprep.subr.bf16.mxu0 %v844_v60 }
 0x49f   :  { %1582 = vmatpush3.bf16.msra.mxu0 %v844_v60 }
 0x4a0   :  { %v1571_v11 = vpop.f32.mrb[36].mxu1  ;;  %1583 = vmatprep.subr.bf16.mxu0 %v845_v58 }
 0x4a1   :  { %v797_v61 = vpop.f32.mrb[37].mxu1 }
 0x4a2   :  { %v1572_v51 = vpop.f32.mrb[38].mxu1 }
 0x4a3   :  { %v847_v62 = vpack.c.bf16 %v1572_v51, %v1571_v11  ;;  %v800_v63 = vpop.f32.mrb[39].mxu1  ;;  %1584 = vmatpush3.bf16.msra.mxu0 %v845_v58 }
 0x4a4   :  { %v846_v0 = vpack.c.bf16 %v800_v63, %v797_v61 }
 0x4a6   :  { %1585 = vmatprep.subr.bf16.mxu0 %v846_v0 }
 0x4a7   :  { %1586 = vmatpush3.bf16.msra.mxu0 %v846_v0 }
 0x4a8   :  { %v1575_v1 = vpop.f32.mrb[40].mxu1  ;;  %1587 = vmatprep.subr.bf16.mxu0 %v847_v62 }
 0x4a9   :  { %v813_v4 = vpop.f32.mrb[41].mxu1 }
 0x4aa   :  { %v1576_v7 = vpop.f32.mrb[42].mxu1 }
 0x4ab   :  { %v849_v8 = vpack.c.bf16 %v1576_v7, %v1575_v1  ;;  %v816_v9 = vpop.f32.mrb[43].mxu1  ;;  %1588 = vmatpush3.bf16.msra.mxu0 %v847_v62 }
 0x4ac   :  { %v848_v10 = vpack.c.bf16 %v816_v9, %v813_v4 }
 0x4ae   :  { %1589 = vmatprep.subr.bf16.mxu0 %v848_v10 }
 0x4af   :  { %1590 = vmatpush3.bf16.msra.mxu0 %v848_v10 }
 0x4b0   :  { %v1579_v12 = vpop.f32.mrb[44].mxu1  ;;  %1591 = vmatprep.subr.bf16.mxu0 %v849_v8 }
 0x4b1   :  { %v829_v13 = vpop.f32.mrb[45].mxu1 }
 0x4b2   :  { %v1580_v14 = vpop.f32.mrb[46].mxu1 }
 0x4b3   :  { %v851_v15 = vpack.c.bf16 %v1580_v14, %v1579_v12  ;;  %v832_v6 = vpop.f32.mrb[47].mxu1  ;;  %1592 = vmatpush3.bf16.msra.mxu0 %v849_v8 }
 0x4b4   :  { %v850_v16 = vpack.c.bf16 %v832_v6, %v829_v13 }
 0x4b6   :  { %1593 = vmatprep.subr.bf16.mxu0 %v850_v16 }
 0x4b7   :  { %1594 = vmatpush3.bf16.msra.mxu0 %v850_v16 }
 0x4b8   :  { %1595 = vmatprep.subr.bf16.mxu0 %v851_v15 }
 0x4bb   :  { %1596 = vmatpush3.bf16.msra.mxu0 %v851_v15 }
 0x4bc   :  { %1633 = vmatprep.subr.bf16.mxu0 %v1775_v17 }
 0x4be   :  { %1598 = vmatmul.mubr.bf16.vlgmr.msra.gmra.mrb[32].mxu0 %v1882_v25  ;;  %v1704_v25 = vld [vmem:[#allocation2 + $0x80] sm:$0xff]  }
 0x4bf   :  { %1601 = vmatprep.mubr.bf16.mxu0 %v1887_v26  ;;  %1634 = vmatpush3.bf16.msra.mxu0 %v1704_v25  ;;  %v1705_v26 = vld [vmem:[#allocation2 + $0x88] sm:$0xff]  }
 0x4c0   :  { %1635 = vmatprep.subr.bf16.mxu0 %v1775_v17 }
 0x4c3   :  { %1636 = vmatpush3.bf16.msra.mxu0 %v1705_v26 }
 0x4c4   :  { %1637 = vmatprep.subr.bf16.mxu0 %v1775_v17 }
 0x4c6   :  { %1602 = vmatmul.mubr.bf16.gmra.mrb[36].mxu0 %v1894_v27  ;;  %v1706_v27 = vld [vmem:[#allocation2 + $0x90] sm:$0xff]  }
 0x4c7   :  { %1605 = vmatprep.mubr.bf16.mxu0 %v1899_v28  ;;  %1638 = vmatpush3.bf16.msra.mxu0 %v1706_v27  ;;  %v1707_v28 = vld [vmem:[#allocation2 + $0x98] sm:$0xff]  }
 0x4c8   :  { %1639 = vmatprep.subr.bf16.mxu0 %v1775_v17 }
 0x4cb   :  { %1640 = vmatpush3.bf16.msra.mxu0 %v1707_v28 }
 0x4cc   :  { %1641 = vmatprep.subr.bf16.mxu0 %v1775_v17 }
 0x4ce   :  { %1606 = vmatmul.mubr.bf16.gmra.mrb[40].mxu0 %v1906_v29  ;;  %v1708_v29 = vld [vmem:[#allocation2 + $0xa0] sm:$0xff]  }
 0x4cf   :  { %1609 = vmatprep.mubr.bf16.mxu0 %v1911_v30  ;;  %1642 = vmatpush3.bf16.msra.mxu0 %v1708_v29  ;;  %v1709_v30 = vld [vmem:[#allocation2 + $0xa8] sm:$0xff]  }
 0x4d0   :  { %1643 = vmatprep.subr.bf16.mxu0 %v1775_v17 }
 0x4d3   :  { %1644 = vmatpush3.bf16.msra.mxu0 %v1709_v30  ;;  %v969_v30 = vld [vmem:[%s2014_s2] sm:$0xff]  ;;  %s1777_s2 = smov [#allocation5]  }
 0x4d4   :  { %1645 = vmatprep.subr.bf16.mxu0 %v1775_v17  ;;  %s1262_s11 = sshll.u32 %s1777_s2, 4  ;;  %s1263_s11 = int_to_ptr.vmem [resolvable:$true] %s1262_s11 }
 0x4d5   :  { %s1746_s12 = scalar_lea.vmem %s1263_s11, 128  ;;  %p1751_p9 = scmp.lt.s32.totalorder %s1263_s11, %s1263_s11 }
 0x4d6   :  { %1610 = vmatmul.mubr.bf16.gmra.mrb[44].mxu0 %v1918_v31  ;;  %v1710_v31 = vld [vmem:[#allocation2 + $0xb0] sm:$0xff]   ;;  %p1747_p8 = scmp.ne.s32.totalorder %s1263_s11, %s1746_s12  ;;  %p1752_p10 = scmp.lt.s32.totalorder %s1746_s12, %s1746_s12 }
 0x4d7   :  { %1649 = vmatprep.mubr.msk.bf16.mxu0 %vm1776_vm2, %v1775_v17  ;;  %1646 = vmatpush3.bf16.msra.mxu0 %v1710_v31  ;;  %v970_v31 = vpack.c.bf16 %v969_v30, %v969_v30 }
 0x4d8   :  { %1647 = vmatprep.subr.bf16.mxu0 %v1775_v17  ;;  %p1753_p11 = por %p1752_p10, %p1751_p9 }
 0x4da   :  { %p1754_p12 = pnand %p1753_p11, %p1747_p8 }
 0x4db   :  { %1648 = vmatpush3.bf16.msra.mxu0 %v1711_v18 }
 0x591   :  { %v1599_v20 = vpop.f32.mrb[32].mxu0 }
 0x592   :  { %v899_v21 = vadd.f32 %v1599_v20, %v855_v19  ;;  %v890_v22 = vpop.f32.mrb[33].mxu0  ;;  %v1713_v20 = vld [vmem:[#allocation2 + $0xc8] sm:$0xff]  }
 0x593   :  { %v891_v23 = vadd.f32 %v890_v22, %v855_v19  ;;  %v1600_v24 = vpop.f32.mrb[34].mxu0  ;;  %v1715_v22 = vld [vmem:[#allocation2 + $0xd8] sm:$0xff]  }
 0x594   :  { %v902_v32 = vadd.f32 %v1600_v24, %v855_v19  ;;  %v893_v33 = vpop.f32.mrb[35].mxu0  ;;  %v955_v35 = vmax.f32 %v899_v21, 0.0  ;;  %v1714_v21 = vld [vmem:[#allocation2 + $0xd0] sm:$0xff]   ;;  %v1717_v24 = vld [vmem:[#allocation2 + $0xe8] sm:$0xff]  }
 0x595   :  { %v894_v34 = vadd.f32 %v893_v33, %v855_v19  ;;  %v953_v37 = vmax.f32 %v891_v23, 0.0  ;;  %v1716_v23 = vld [vmem:[#allocation2 + $0xe0] sm:$0xff]  }
 0x596   :  { %v956_v36 = vmax.f32 %v902_v32, 0.0 }
 0x597   :  { %v954_v38 = vmax.f32 %v894_v34, 0.0 }
 0x598   :  { %v972_v39 = vpack.c.bf16 %v956_v36, %v955_v35 }
 0x599   :  { %v971_v40 = vpack.c.bf16 %v954_v38, %v953_v37  ;;  %v1603_v41 = vpop.f32.mrb[36].mxu0  ;;  %v1718_v37 = vld [vmem:[#allocation2 + $0xf0] sm:$0xff]   ;;  %v1719_v38 = vld [vmem:[#allocation2 + $0xf8] sm:$0xff]  }
 0x59a   :  { %v915_v42 = vadd.f32 %v1603_v41, %v855_v19  ;;  %v906_v43 = vpop.f32.mrb[37].mxu0 }
 0x59b   :  { %v907_v44 = vadd.f32 %v906_v43, %v855_v19  ;;  %v1604_v45 = vpop.f32.mrb[38].mxu0  ;;  %1614 = vmatpush3.bf16.msra.mxu1 %v971_v40 }
 0x59c   :  { %v918_v46 = vadd.f32 %v1604_v45, %v855_v19  ;;  %v909_v47 = vpop.f32.mrb[39].mxu0  ;;  %1615 = vmatprep.subr.bf16.mxu1 %v1775_v17  ;;  %v959_v49 = vmax.f32 %v915_v42, 0.0 }
 0x59d   :  { %v910_v48 = vadd.f32 %v909_v47, %v855_v19  ;;  %v957_v52 = vmax.f32 %v907_v44, 0.0 }
 0x59e   :  { %v960_v50 = vmax.f32 %v918_v46, 0.0 }
 0x59f   :  { %v958_v53 = vmax.f32 %v910_v48, 0.0  ;;  %1616 = vmatpush3.bf16.msra.mxu1 %v972_v39  ;;  %v1039_v39 = vsub.s32 3, %v1934_v3  ;;  %v1150_v48 = vsub.s32 4, %v1934_v3 }
 0x5a0   :  { %v974_v54 = vpack.c.bf16 %v960_v50, %v959_v49  ;;  %1617 = vmatprep.subr.bf16.mxu1 %v1775_v17  ;;  %v1241_v49 = vand.u32 127, %v234_v2 }
 0x5a1   :  { %v973_v55 = vpack.c.bf16 %v958_v53, %v957_v52  ;;  %v1607_v56 = vpop.f32.mrb[40].mxu0  ;;  %v1040_v40 = vrot.slane %v1940_v5, %v1039_v39 }
 0x5a2   :  { %v931_v57 = vadd.f32 %v1607_v56, %v855_v19  ;;  %v922_v58 = vpop.f32.mrb[41].mxu0  ;;  %vm1242_vm3 = vcmp.lt.s32.totalorder %v1241_v49, 2 }
 0x5a3   :  { %v923_v59 = vadd.f32 %v922_v58, %v855_v19  ;;  %v1608_v60 = vpop.f32.mrb[42].mxu0  ;;  %1618 = vmatpush3.bf16.msra.mxu1 %v973_v55 }
 0x5a4   :  { %v934_v11 = vadd.f32 %v1608_v60, %v855_v19  ;;  %v925_v61 = vpop.f32.mrb[43].mxu0  ;;  %1619 = vmatprep.subr.bf16.mxu1 %v1775_v17  ;;  %v963_v62 = vmax.f32 %v931_v57, 0.0 }
 0x5a5   :  { %v926_v51 = vadd.f32 %v925_v61, %v855_v19  ;;  %v961_v0 = vmax.f32 %v923_v59, 0.0 }
 0x5a6   :  { %v964_v63 = vmax.f32 %v934_v11, 0.0 }
 0x5a7   :  { %v962_v1 = vmax.f32 %v926_v51, 0.0  ;;  %1620 = vmatpush3.bf16.msra.mxu1 %v974_v54 }
 0x5a8   :  { %v976_v4 = vpack.c.bf16 %v964_v63, %v963_v62  ;;  %1621 = vmatprep.subr.bf16.mxu1 %v1775_v17 }
 0x5a9   :  { %v975_v7 = vpack.c.bf16 %v962_v1, %v961_v0  ;;  %v1611_v8 = vpop.f32.mrb[44].mxu0 }
 0x5aa   :  { %v947_v9 = vadd.f32 %v1611_v8, %v855_v19  ;;  %v938_v10 = vpop.f32.mrb[45].mxu0 }
 0x5ab   :  { %v939_v12 = vadd.f32 %v938_v10, %v855_v19  ;;  %v1612_v13 = vpop.f32.mrb[46].mxu0  ;;  %1622 = vmatpush3.bf16.msra.mxu1 %v975_v7 }
 0x5ac   :  { %v950_v14 = vadd.f32 %v1612_v13, %v855_v19  ;;  %v941_v15 = vpop.f32.mrb[47].mxu0  ;;  %1623 = vmatprep.subr.bf16.mxu1 %v1775_v17  ;;  %v967_v16 = vmax.f32 %v947_v9, 0.0 }
 0x5ad   :  { %v942_v6 = vadd.f32 %v941_v15, %v855_v19  ;;  %v965_v26 = vmax.f32 %v939_v12, 0.0  ;;  %v1712_v19 = vld [vmem:[#allocation2 + $0xc0] sm:$0xff]  }
 0x5ae   :  { %v968_v25 = vmax.f32 %v950_v14, 0.0 }
 0x5af   :  { %v966_v27 = vmax.f32 %v942_v6, 0.0  ;;  %1624 = vmatpush3.bf16.msra.mxu1 %v976_v4 }
 0x5b0   :  { %v978_v28 = vpack.c.bf16 %v968_v25, %v967_v16  ;;  %1625 = vmatprep.subr.bf16.mxu1 %v1775_v17 }
 0x5b1   :  { %v977_v29 = vpack.c.bf16 %v966_v27, %v965_v26 }
 0x5b3   :  { %1626 = vmatpush3.bf16.msra.mxu1 %v977_v29 }
 0x5b4   :  { %1627 = vmatprep.subr.bf16.mxu1 %v1775_v17 }
 0x5b7   :  { %1628 = vmatpush3.bf16.msra.mxu1 %v978_v28 }
 0x5b8   :  { %1653 = vmatprep.subr.bf16.mxu1 %v1775_v17 }
 0x5ba   :  { %1630 = vmatmul.mubr.bf16.vlgmr.msra.gmra.mrb[48].mxu1 %v970_v31 }
 0x5bb   :  { %1669 = vmatprep.mubr.msk.bf16.mxu1 %vm1776_vm2, %v1775_v17  ;;  %1654 = vmatpush3.bf16.msra.mxu1 %v1712_v19 }
 0x5bc   :  { %1655 = vmatprep.subr.bf16.mxu1 %v1775_v17 }
 0x5bf   :  { %1656 = vmatpush3.bf16.msra.mxu1 %v1713_v20 }
 0x5c0   :  { %1657 = vmatprep.subr.bf16.mxu1 %v1775_v17 }
 0x5c3   :  { %1658 = vmatpush3.bf16.msra.mxu1 %v1714_v21 }
 0x5c4   :  { %1659 = vmatprep.subr.bf16.mxu1 %v1775_v17 }
 0x5c7   :  { %1660 = vmatpush3.bf16.msra.mxu1 %v1715_v22 }
 0x5c8   :  { %1661 = vmatprep.subr.bf16.mxu1 %v1775_v17 }
 0x5cb   :  { %1662 = vmatpush3.bf16.msra.mxu1 %v1716_v23 }
 0x5cc   :  { %1663 = vmatprep.subr.bf16.mxu1 %v1775_v17 }
 0x5cf   :  { %1664 = vmatpush3.bf16.msra.mxu1 %v1717_v24 }
 0x5d0   :  { %1665 = vmatprep.subr.bf16.mxu1 %v1775_v17 }
 0x5d3   :  { %1666 = vmatpush3.bf16.msra.mxu1 %v1718_v37 }
 0x5d4   :  { %1667 = vmatprep.subr.bf16.mxu1 %v1775_v17  ;;  %v1151_v17 = vrot.slane %v1940_v5, %v1150_v48 }
 0x5d7   :  { %1668 = vmatpush3.bf16.msra.mxu1 %v1719_v38 }
 0x68d   :  { %v1013_v32 = vpop.f32.mrb[48].mxu1 }
 0x68e   :  { %v1019_v33 = vpack.c.bf16 %v1013_v32, %v1013_v32  ;;  %v1631_v34 = vpop.f32.mrb[49].mxu1 }
 0x68f   :  { %v1016_v35 = vpop.f32.mrb[50].mxu1 }
 0x690   :  { %v1632_v36 = vpop.f32.mrb[51].mxu1  ;;  %1650 = vmatmul.mubr.bf16.vlgmr.msra.gmra.mrb[48].mxu0 %v1019_v33 }
 0x763   :  { %v1123_v41 = vpop.f32.mrb[48].mxu0 }
 0x764   :  { %v1124_v42 = vadd.f32 %v1123_v41, %v1040_v40  ;;  %v1651_v43 = vpop.f32.mrb[49].mxu0 }
 0x765   :  { %v1126_v44 = vpop.f32.mrb[50].mxu0 }
 0x766   :  { %v1129_v45 = vmax.f32 %v1124_v42, 0.0  ;;  %v1652_v46 = vpop.f32.mrb[51].mxu0 }
 0x768   :  { %v1130_v47 = vpack.c.bf16 %v1129_v45, %v1129_v45 }
 0x76a   :  { %1670 = vmatmul.mubr.bf16.vlgmr.msra.gmra.mrb[52].mxu1 %v1130_v47 }
 0x83d   :  { %v1234_v50 = vpop.f32.mrb[52].mxu1 }
 0x83e   :  { %v1235_v52 = vadd.f32 %v1234_v50, %v1151_v17  ;;  %v1671_v53 = vpop.f32.mrb[53].mxu1 }
 0x83f   :  { %v1237_v54 = vpop.f32.mrb[54].mxu1 }
 0x840   :  { %v1672_v55 = vpop.f32.mrb[55].mxu1  ;;  %v1243_v56 = vsel %vm1242_vm3, %v1235_v52, -1e+30 }
 0x841   :  { %1244 = vmax.xlane.f32.xlu0 %v1243_v56 }
 0x8ce   :  { %v1245_v57 = vpop.xlane.xlu0 %1244 }
 0x8cf   :  { %v1246_v58 = vsub.f32 %v1243_v56, %v1245_v57 }
 0x8d1   :  { %v1247_v59 = vmul.f32 1.442695, %v1246_v58 }
 0x8d3   :  { %1720 = vpow2.f32 %v1247_v59 }
 0x8dd   :  { %v1721_v60 = vpop.eup %1720 }
 0x8de   :  { %v1249_v11 = vsel %vm1242_vm3, %v1721_v60, 0.0 }
 0x8df   :  { %1250 = vadd.xlane.f32.xlu0 %v1249_v11 }
 0x96c   :  { %v1251_v3 = vpop.xlane.xlu0 %1250 }
 0x96d   :  { %1722 = vlog2.f32 %v1251_v3 }
 0x977   :  { %v1723_v2 = vpop.eup %1722 }
 0x978   :  { %v1253_v5 = vmul.f32 0.6931472, %v1723_v2 }
 0x97a   :  { %v1254_v61 = vsub.f32 %v1246_v58, %v1253_v5 }
 0x97c   :  { %1255 = vst [vmem:[#allocation5] sm:$0xff] %v1254_v61 }
 0x97d   :  { %1757 = shalt.err (!%p1754_p12)
}
 0x97e   :  { %s1758_s15 = scalar_lea.hbm %s2018_s6, 128 }
 0x97f   :  { %p1759_p13 = scmp.ne.s32.totalorder %s2018_s6, %s1758_s15  ;;  %p1762_p0 = scmp.lt.u32.totalorder %s1758_s15, %s2018_s6 }
 0x981   :  { %p1764_p1 = pnand %p1762_p0, %p1759_p13 }
 0x983   :  { %1767 = shalt.err (!%p1764_p1)
}
 0x984   :  { %1265 = dma.vmem_to_hbm [thread:$0]  %s1263_s11, 128, %s2018_s6, [#allocation4]  }
 0x985   :  { %1770 = dma.done.wait [#allocation4], 128  }
 0x986   :  { %1771 = vsyncadd [#allocation4], 4294967168 }
 0x987   :  { %1269 = vsyncpa [#allocation3], 1 }
 0x988   :  { %1270 = vsyncpa [#allocation4], 1 }

</bundles_post_ra>
